<compile_context>
chip_gen: v5e
topology: v5e:2x2
jax: 0.10.0
libtpu: 0.0.40
codegen_flags: <defaults>
</compile_context>

<pallas_src>
import jax
import jax.numpy as jnp
from jax.experimental import pallas as pl
from jax.experimental.pallas import tpu as pltpu


def _linear_linear_kernel(x_ref, wkt_ref, bias_ref, o_ref):
    # x_ref:   (TB, IN)   flattened input rows (IN = in0*in1), lane-dense
    # wkt_ref: (IN, OUT)  kron(W1, W2)^T, resident across the grid
    # bias_ref:(1,  OUT)  folded bias (b1 * rowsum(W2) + b2), f32
    # o_ref:   (TB, OUT)  lane-dense flattened output
    y = jnp.dot(x_ref[...], wkt_ref[...], preferred_element_type=jnp.float32)
    o_ref[...] = (y + bias_ref[...]).astype(o_ref.dtype)


def _pick_batch_block(batch, in_feat, out_feat, itemsize,
                      vmem_budget_bytes=10 * 1024 * 1024, max_block=512):
    """Largest batch block <= max_block whose double-buffered x/out tiles fit the budget.

    The budget (10 MiB) is chosen against the *smallest* default scoped VMEM across
    generations (v5e: 16 MiB), leaving headroom for the resident kron weight, bias,
    and compiler scratch, so the pipeline stays double-buffered everywhere.
    """
    per_row = 2 * (in_feat + out_feat) * itemsize        # double-buffered x + out tiles
    cap = min(max_block, max(8, vmem_budget_bytes // max(per_row, 1)))
    cap = max(8, (cap // 8) * 8)                         # keep sublane-aligned blocks
    return int(min(batch, cap))


def linear_linear(x, w1, b1, w2, b2, *, block_b=None, matmul_dtype=None):
    """x: (B, in0, in1), w1: (out0, in0), b1: (out0,), w2: (out1, in1), b2: (out1,)."""
    B, in0, in1 = x.shape
    out0 = w1.shape[0]
    out1 = w2.shape[0]
    IN = in0 * in1
    OUT = out0 * out1

    dtype = matmul_dtype if matmul_dtype is not None else x.dtype

    # Wrapper-side (XLA) layout / weight plumbing, done once:
    x_flat = x.reshape(B, IN).astype(dtype)                           # lane-dense rows
    wkt = jnp.kron(w1.astype(jnp.float32),
                   w2.astype(jnp.float32)).T.astype(dtype)            # (IN, OUT)
    bias = (b1.astype(jnp.float32)[:, None]
            * jnp.sum(w2.astype(jnp.float32), axis=1)[None, :]
            + b2.astype(jnp.float32)[None, :]).reshape(1, OUT)        # folded (1, OUT)

    if block_b is None:
        block_b = _pick_batch_block(B, IN, OUT, jnp.dtype(dtype).itemsize)
    block_b = int(min(block_b, B))
    grid_b = pl.cdiv(B, block_b)

    cost = pl.CostEstimate(
        flops=2 * B * IN * OUT,
        transcendentals=0,
        bytes_accessed=(B * IN + B * OUT) * jnp.dtype(dtype).itemsize
                       + (IN * OUT) * jnp.dtype(dtype).itemsize + OUT * 4,
    )

    out_flat = pl.pallas_call(
        _linear_linear_kernel,
        out_shape=jax.ShapeDtypeStruct((B, OUT), x.dtype),
        grid_spec=pltpu.PrefetchScalarGridSpec(
            num_scalar_prefetch=0,
            grid=(grid_b,),
            in_specs=[
                pl.BlockSpec((block_b, IN), lambda b: (b, 0)),   # x batch block
                pl.BlockSpec((IN, OUT), lambda b: (0, 0)),       # kron(W1,W2)^T resident
                pl.BlockSpec((1, OUT), lambda b: (0, 0)),        # folded bias resident
            ],
            out_specs=pl.BlockSpec((block_b, OUT), lambda b: (b, 0)),
        ),
        compiler_params=pltpu.CompilerParams(
            dimension_semantics=("parallel",)),
        cost_estimate=cost,
    )(x_flat, wkt, bias)

    return out_flat.reshape(B, out0, out1)


if __name__ == "__main__":
    # Module config: input_shape=(in0, in1), output_shape=(out0, out1)
    in0, in1 = 16, 32
    out0, out1 = 8, 24
    B = 8

    key = jax.random.PRNGKey(0)
    kx, kw1, kb1, kw2, kb2 = jax.random.split(key, 5)

    x = jax.random.normal(kx, (B, in0, in1), dtype=jnp.float32)

    # Deterministic init mimicking nn.Linear's uniform(-1/sqrt(fan_in), 1/sqrt(fan_in))
    bound1 = 1.0 / (in0 ** 0.5)
    w1 = jax.random.uniform(kw1, (out0, in0), jnp.float32, -bound1, bound1)
    b1 = jax.random.uniform(kb1, (out0,), jnp.float32, -bound1, bound1)
    bound2 = 1.0 / (in1 ** 0.5)
    w2 = jax.random.uniform(kw2, (out1, in1), jnp.float32, -bound2, bound2)
    b2 = jax.random.uniform(kb2, (out1,), jnp.float32, -bound2, bound2)

    y = linear_linear(x, w1, b1, w2, b2)
    y = jax.block_until_ready(y)

    # Pure-JAX reference of the PyTorch forward for sanity checking.
    t = jnp.swapaxes(x, -1, -2) @ w1.T + b1          # (B, in1, out0)
    y_ref = jnp.swapaxes(t, -1, -2) @ w2.T + b2      # (B, out0, out1)
    assert y.shape == (B, out0, out1)
    assert jnp.allclose(y, y_ref, atol=1e-4, rtol=1e-4), float(jnp.max(jnp.abs(y - y_ref)))

    print("KERNEL_OK")
</pallas_src>

<mosaic_0001>
module attributes {stable_mosaic.version = 11 : i64} {
  func.func @_linear_linear_kernel(%arg0: i32, %arg1: memref<8x512xf32, #tpu.memory_space<vmem>>, %arg2: memref<512x192xf32, #tpu.memory_space<vmem>>, %arg3: memref<1x192xf32, #tpu.memory_space<vmem>>, %arg4: memref<8x192xf32, #tpu.memory_space<vmem>>) attributes {dimension_semantics = [#tpu.dimension_semantics<parallel>], iteration_bounds = array<i64: 1>, scalar_prefetch = 0 : i64, scratch_operands = 0 : i64, tpu.core_type = #tpu.core_type<tc>, window_params = [{transform_indices = @transform_0, window_bounds = array<i64: 8, 512>}, {pipeline_mode = #tpu.pipeline_mode<synchronous>, transform_indices = @transform_1, window_bounds = array<i64: 512, 192>}, {pipeline_mode = #tpu.pipeline_mode<synchronous>, transform_indices = @transform_2, window_bounds = array<i64: 1, 192>}, {transform_indices = @transform_3, window_bounds = array<i64: 8, 192>}]} {
    %c0 = arith.constant 0 : index
    %c0_0 = arith.constant 0 : index
    %0 = vector.load %arg1[%c0, %c0_0] : memref<8x512xf32, #tpu.memory_space<vmem>>, vector<8x512xf32>
    %c0_1 = arith.constant 0 : index
    %c0_2 = arith.constant 0 : index
    %1 = vector.load %arg2[%c0_1, %c0_2] : memref<512x192xf32, #tpu.memory_space<vmem>>, vector<512x192xf32>
    %cst = arith.constant dense<0.000000e+00> : vector<8x192xf32>
    %2 = tpu.matmul %0, %1, %cst {dimension_numbers = #tpu.dot_dimension_numbers<[1], [0], [0], [1], [0, 0, 1, 1], [], []>} : vector<8x512xf32>, vector<512x192xf32>, vector<8x192xf32> -> vector<8x192xf32>
    %c0_3 = arith.constant 0 : index
    %c0_4 = arith.constant 0 : index
    %3 = vector.load %arg3[%c0_3, %c0_4] : memref<1x192xf32, #tpu.memory_space<vmem>>, vector<1x192xf32>
    %4 = vector.broadcast %3 : vector<1x192xf32> to vector<8x192xf32>
    %5 = arith.addf %2, %4 : vector<8x192xf32>
    %c0_5 = arith.constant 0 : index
    %c0_6 = arith.constant 0 : index
    %6 = vector.load %arg4[%c0_5, %c0_6] : memref<8x192xf32, #tpu.memory_space<vmem>>, vector<8x192xf32>
    tpu.vector_store %arg4[%c0_5, %c0_6], %5 {strides = array<i32>} : memref<8x192xf32, #tpu.memory_space<vmem>>, vector<8x192xf32>,
    return
  }
  func.func @transform_0(%arg0: i32) -> (i32, i32) {
    %c0_i32 = arith.constant 0 : i32
    %c0_i32_0 = arith.constant 0 : i32
    return %arg0, %c0_i32 : i32, i32
  }
  func.func @transform_1(%arg0: i32) -> (i32, i32) {
    %c0_i32 = arith.constant 0 : i32
    %c0_i32_0 = arith.constant 0 : i32
    %c0_i32_1 = arith.constant 0 : i32
    return %c0_i32, %c0_i32_0 : i32, i32
  }
  func.func @transform_2(%arg0: i32) -> (i32, i32) {
    %c0_i32 = arith.constant 0 : i32
    %c0_i32_0 = arith.constant 0 : i32
    %c0_i32_1 = arith.constant 0 : i32
    return %c0_i32, %c0_i32_0 : i32, i32
  }
  func.func @transform_3(%arg0: i32) -> (i32, i32) {
    %c0_i32 = arith.constant 0 : i32
    %c0_i32_0 = arith.constant 0 : i32
    return %arg0, %c0_i32 : i32, i32
  }
}

</mosaic_0001>

<bundles_post_ra>
// kernel: tpu_custom_call.1
= control target key start
LH: loop header
LB: loop body
LE: loop exit
PB: predicated region body
PF: predicated region fallthrough
CT: control target
= control target key end

     0   :  { %s782_s0 = inlined_call_operand.vmem [shape: f32[8,512], index: 0, kind: input, shape index: {}]   ;;  %s783_s1 = inlined_call_operand.vmem [shape: f32[512,192], index: 1, kind: input, shape index: {}]   ;;  %s784_s2 = inlined_call_operand.vmem [shape: f32[1,192], index: 2, kind: input, shape index: {}]   ;;  %s785_s3 = inlined_call_operand.hbm [shape: f32[8,192], index: 3, kind: output, shape index: {}]  }
   0x1   :  { %v113_v0 = vld [vmem:[%s783_s1 + $0x2f0] sm:$0xff]  ;;  %v111_v2 = vld [vmem:[%s783_s1 + $0x2e0] sm:$0xff]  ;;  %v114_v62 = vld [vmem:[%s783_s1 + $0x2f8] sm:$0xff] }
   0x2   :  { %v49_v1 = vld [vmem:[%s783_s1 + $0xf0] sm:$0xff]  ;;  %193 = vmatpush.msra.mxu2 %v113_v0  ;;  %v47_v4 = vld [vmem:[%s783_s1 + $0xe0] sm:$0xff]  ;;  %v50_v0 = vld [vmem:[%s783_s1 + $0xf8] sm:$0xff] }
   0x3   :  { %153 = vmatpush.msra.mxu0 %v49_v1  ;;  %v145_v3 = vld [vmem:[%s783_s1 + $0x3f0] sm:$0xff]  ;;  %v143_v7 = vld [vmem:[%s783_s1 + $0x3e0] sm:$0xff]  ;;  %v146_v1 = vld [vmem:[%s783_s1 + $0x3f8] sm:$0xff] }
   0x4   :  { %v81_v5 = vld [vmem:[%s783_s1 + $0x1f0] sm:$0xff]  ;;  %213 = vmatpush.msra.mxu3 %v145_v3  ;;  %194 = vmatpush.msra.mxu2 %v111_v2  ;;  %v79_v9 = vld [vmem:[%s783_s1 + $0x1e0] sm:$0xff]  ;;  %v112_v2 = vld [vmem:[%s783_s1 + $0x2e8] sm:$0xff] }
   0x5   :  { %173 = vmatpush.msra.mxu1 %v81_v5  ;;  %v109_v6 = vld [vmem:[%s783_s1 + $0x2d0] sm:$0xff]  ;;  %154 = vmatpush.msra.mxu0 %v47_v4  ;;  %v107_v11 = vld [vmem:[%s783_s1 + $0x2c0] sm:$0xff]  ;;  %v48_v4 = vld [vmem:[%s783_s1 + $0xe8] sm:$0xff] }
   0x6   :  { %v45_v8 = vld [vmem:[%s783_s1 + $0xd0] sm:$0xff]  ;;  %214 = vmatpush.msra.mxu3 %v143_v7  ;;  %v43_v12 = vld [vmem:[%s783_s1 + $0xc0] sm:$0xff]  ;;  %195 = vmatpush.msra.mxu2 %v109_v6  ;;  %v82_v5 = vld [vmem:[%s783_s1 + $0x1f8] sm:$0xff] }
   0x7   :  { %v141_v10 = vld [vmem:[%s783_s1 + $0x3d0] sm:$0xff]  ;;  %174 = vmatpush.msra.mxu1 %v79_v9  ;;  %155 = vmatpush.msra.mxu0 %v45_v8  ;;  %v139_v14 = vld [vmem:[%s783_s1 + $0x3c0] sm:$0xff]  ;;  %v110_v6 = vld [vmem:[%s783_s1 + $0x2d8] sm:$0xff] }
   0x8   :  { %v77_v13 = vld [vmem:[%s783_s1 + $0x1d0] sm:$0xff]  ;;  %v75_v15 = vld [vmem:[%s783_s1 + $0x1c0] sm:$0xff]  ;;  %215 = vmatpush.msra.mxu3 %v141_v10  ;;  %196 = vmatpush.msra.mxu2 %v107_v11  ;;  %v144_v7 = vld [vmem:[%s783_s1 + $0x3e8] sm:$0xff] }
   0x9   :  { %175 = vmatpush.msra.mxu1 %v77_v13  ;;  %v105_v16 = vld [vmem:[%s783_s1 + $0x2b0] sm:$0xff]  ;;  %156 = vmatpush.msra.mxu0 %v43_v12  ;;  %v103_v20 = vld [vmem:[%s783_s1 + $0x2a0] sm:$0xff]  ;;  %v46_v8 = vld [vmem:[%s783_s1 + $0xd8] sm:$0xff] }
   0xa   :  { %v41_v17 = vld [vmem:[%s783_s1 + $0xb0] sm:$0xff]  ;;  %216 = vmatpush.msra.mxu3 %v139_v14  ;;  %v39_v21 = vld [vmem:[%s783_s1 + $0xa0] sm:$0xff]  ;;  %197 = vmatpush.msra.mxu2 %v105_v16  ;;  %v80_v9 = vld [vmem:[%s783_s1 + $0x1e8] sm:$0xff] }
   0xb   :  { %v137_v18 = vld [vmem:[%s783_s1 + $0x3b0] sm:$0xff]  ;;  %176 = vmatpush.msra.mxu1 %v75_v15  ;;  %157 = vmatpush.msra.mxu0 %v41_v17  ;;  %v135_v22 = vld [vmem:[%s783_s1 + $0x3a0] sm:$0xff]  ;;  %v108_v10 = vld [vmem:[%s783_s1 + $0x2c8] sm:$0xff] }
   0xc   :  { %v73_v19 = vld [vmem:[%s783_s1 + $0x1b0] sm:$0xff]  ;;  %v71_v23 = vld [vmem:[%s783_s1 + $0x1a0] sm:$0xff]  ;;  %217 = vmatpush.msra.mxu3 %v137_v18  ;;  %198 = vmatpush.msra.mxu2 %v103_v20  ;;  %v142_v11 = vld [vmem:[%s783_s1 + $0x3d8] sm:$0xff] }
   0xd   :  { %177 = vmatpush.msra.mxu1 %v73_v19  ;;  %v101_v24 = vld [vmem:[%s783_s1 + $0x290] sm:$0xff]  ;;  %158 = vmatpush.msra.mxu0 %v39_v21  ;;  %v99_v28 = vld [vmem:[%s783_s1 + $0x280] sm:$0xff]  ;;  %v44_v12 = vld [vmem:[%s783_s1 + $0xc8] sm:$0xff] }
   0xe   :  { %v37_v25 = vld [vmem:[%s783_s1 + $0x90] sm:$0xff]  ;;  %218 = vmatpush.msra.mxu3 %v135_v22  ;;  %v35_v29 = vld [vmem:[%s783_s1 + $0x80] sm:$0xff]  ;;  %199 = vmatpush.msra.mxu2 %v101_v24  ;;  %v78_v13 = vld [vmem:[%s783_s1 + $0x1d8] sm:$0xff] }
   0xf   :  { %v133_v26 = vld [vmem:[%s783_s1 + $0x390] sm:$0xff]  ;;  %178 = vmatpush.msra.mxu1 %v71_v23  ;;  %159 = vmatpush.msra.mxu0 %v37_v25  ;;  %v131_v30 = vld [vmem:[%s783_s1 + $0x380] sm:$0xff]  ;;  %v106_v14 = vld [vmem:[%s783_s1 + $0x2b8] sm:$0xff] }
  0x10   :  { %v69_v27 = vld [vmem:[%s783_s1 + $0x190] sm:$0xff]  ;;  %v67_v31 = vld [vmem:[%s783_s1 + $0x180] sm:$0xff]  ;;  %219 = vmatpush.msra.mxu3 %v133_v26  ;;  %200 = vmatpush.msra.mxu2 %v99_v28  ;;  %v140_v15 = vld [vmem:[%s783_s1 + $0x3c8] sm:$0xff] }
  0x11   :  { %179 = vmatpush.msra.mxu1 %v69_v27  ;;  %v97_v32 = vld [vmem:[%s783_s1 + $0x270] sm:$0xff]  ;;  %160 = vmatpush.msra.mxu0 %v35_v29  ;;  %v95_v36 = vld [vmem:[%s783_s1 + $0x260] sm:$0xff]  ;;  %v42_v16 = vld [vmem:[%s783_s1 + $0xb8] sm:$0xff] }
  0x12   :  { %v33_v33 = vld [vmem:[%s783_s1 + $0x70] sm:$0xff]  ;;  %220 = vmatpush.msra.mxu3 %v131_v30  ;;  %v31_v37 = vld [vmem:[%s783_s1 + $0x60] sm:$0xff]  ;;  %201 = vmatpush.msra.mxu2 %v97_v32  ;;  %v76_v17 = vld [vmem:[%s783_s1 + $0x1c8] sm:$0xff] }
  0x13   :  { %v129_v34 = vld [vmem:[%s783_s1 + $0x370] sm:$0xff]  ;;  %180 = vmatpush.msra.mxu1 %v67_v31  ;;  %161 = vmatpush.msra.mxu0 %v33_v33  ;;  %v127_v38 = vld [vmem:[%s783_s1 + $0x360] sm:$0xff]  ;;  %v104_v18 = vld [vmem:[%s783_s1 + $0x2a8] sm:$0xff] }
  0x14   :  { %v65_v35 = vld [vmem:[%s783_s1 + $0x170] sm:$0xff]  ;;  %v63_v39 = vld [vmem:[%s783_s1 + $0x160] sm:$0xff]  ;;  %221 = vmatpush.msra.mxu3 %v129_v34  ;;  %202 = vmatpush.msra.mxu2 %v95_v36  ;;  %v138_v19 = vld [vmem:[%s783_s1 + $0x3b8] sm:$0xff] }
  0x15   :  { %181 = vmatpush.msra.mxu1 %v65_v35  ;;  %v93_v40 = vld [vmem:[%s783_s1 + $0x250] sm:$0xff]  ;;  %162 = vmatpush.msra.mxu0 %v31_v37  ;;  %v91_v44 = vld [vmem:[%s783_s1 + $0x240] sm:$0xff]  ;;  %v40_v20 = vld [vmem:[%s783_s1 + $0xa8] sm:$0xff] }
  0x16   :  { %v29_v41 = vld [vmem:[%s783_s1 + $0x50] sm:$0xff]  ;;  %222 = vmatpush.msra.mxu3 %v127_v38  ;;  %v27_v45 = vld [vmem:[%s783_s1 + $0x40] sm:$0xff]  ;;  %203 = vmatpush.msra.mxu2 %v93_v40  ;;  %v74_v21 = vld [vmem:[%s783_s1 + $0x1b8] sm:$0xff] }
  0x17   :  { %v125_v42 = vld [vmem:[%s783_s1 + $0x350] sm:$0xff]  ;;  %182 = vmatpush.msra.mxu1 %v63_v39  ;;  %163 = vmatpush.msra.mxu0 %v29_v41  ;;  %v123_v46 = vld [vmem:[%s783_s1 + $0x340] sm:$0xff]  ;;  %v102_v22 = vld [vmem:[%s783_s1 + $0x298] sm:$0xff] }
  0x18   :  { %v61_v43 = vld [vmem:[%s783_s1 + $0x150] sm:$0xff]  ;;  %v59_v47 = vld [vmem:[%s783_s1 + $0x140] sm:$0xff]  ;;  %223 = vmatpush.msra.mxu3 %v125_v42  ;;  %204 = vmatpush.msra.mxu2 %v91_v44  ;;  %v136_v23 = vld [vmem:[%s783_s1 + $0x3a8] sm:$0xff] }
  0x19   :  { %183 = vmatpush.msra.mxu1 %v61_v43  ;;  %v89_v48 = vld [vmem:[%s783_s1 + $0x230] sm:$0xff]  ;;  %164 = vmatpush.msra.mxu0 %v27_v45  ;;  %v87_v52 = vld [vmem:[%s783_s1 + $0x220] sm:$0xff]  ;;  %v38_v24 = vld [vmem:[%s783_s1 + $0x98] sm:$0xff] }
  0x1a   :  { %v25_v49 = vld [vmem:[%s783_s1 + $0x30] sm:$0xff]  ;;  %224 = vmatpush.msra.mxu3 %v123_v46  ;;  %v23_v53 = vld [vmem:[%s783_s1 + $0x20] sm:$0xff]  ;;  %205 = vmatpush.msra.mxu2 %v89_v48  ;;  %v72_v25 = vld [vmem:[%s783_s1 + $0x1a8] sm:$0xff] }
  0x1b   :  { %v121_v50 = vld [vmem:[%s783_s1 + $0x330] sm:$0xff]  ;;  %184 = vmatpush.msra.mxu1 %v59_v47  ;;  %165 = vmatpush.msra.mxu0 %v25_v49  ;;  %v119_v54 = vld [vmem:[%s783_s1 + $0x320] sm:$0xff]  ;;  %v100_v26 = vld [vmem:[%s783_s1 + $0x288] sm:$0xff] }
  0x1c   :  { %v57_v51 = vld [vmem:[%s783_s1 + $0x130] sm:$0xff]  ;;  %v55_v55 = vld [vmem:[%s783_s1 + $0x120] sm:$0xff]  ;;  %225 = vmatpush.msra.mxu3 %v121_v50  ;;  %206 = vmatpush.msra.mxu2 %v87_v52  ;;  %v134_v27 = vld [vmem:[%s783_s1 + $0x398] sm:$0xff] }
  0x1d   :  { %185 = vmatpush.msra.mxu1 %v57_v51  ;;  %v85_v56 = vld [vmem:[%s783_s1 + $0x210] sm:$0xff]  ;;  %166 = vmatpush.msra.mxu0 %v23_v53  ;;  %v83_v60 = vld [vmem:[%s783_s1 + $0x200] sm:$0xff]  ;;  %v36_v28 = vld [vmem:[%s783_s1 + $0x88] sm:$0xff] }
  0x1e   :  { %v21_v57 = vld [vmem:[%s783_s1 + $0x10] sm:$0xff]  ;;  %226 = vmatpush.msra.mxu3 %v119_v54  ;;  %v19_v61 = vld [vmem:[%s783_s1] sm:$0xff]  ;;  %207 = vmatpush.msra.mxu2 %v85_v56  ;;  %v70_v29 = vld [vmem:[%s783_s1 + $0x198] sm:$0xff] }
  0x1f   :  { %v117_v58 = vld [vmem:[%s783_s1 + $0x310] sm:$0xff]  ;;  %186 = vmatpush.msra.mxu1 %v55_v55  ;;  %167 = vmatpush.msra.mxu0 %v21_v57  ;;  %v115_v63 = vld [vmem:[%s783_s1 + $0x300] sm:$0xff] }
  0x20   :  { %v53_v59 = vld [vmem:[%s783_s1 + $0x110] sm:$0xff]  ;;  %227 = vmatpush.msra.mxu3 %v117_v58  ;;  %208 = vmatpush.msra.mxu2 %v83_v60  ;;  %v51_v3 = vld [vmem:[%s783_s1 + $0x100] sm:$0xff] }
  0x21   :  { %187 = vmatpush.msra.mxu1 %v53_v59  ;;  %168 = vmatpush.msra.mxu0 %v19_v61 }
  0x22   :  { %273 = vmatpush.msrb.mxu2 %v114_v62  ;;  %228 = vmatpush.msra.mxu3 %v115_v63 }
  0x23   :  { %233 = vmatpush.msrb.mxu0 %v50_v0  ;;  %188 = vmatpush.msra.mxu1 %v51_v3 }
  0x24   :  { %293 = vmatpush.msrb.mxu3 %v146_v1  ;;  %274 = vmatpush.msrb.mxu2 %v112_v2 }
  0x25   :  { %234 = vmatpush.msrb.mxu0 %v48_v4  ;;  %253 = vmatpush.msrb.mxu1 %v82_v5 }
  0x26   :  { %275 = vmatpush.msrb.mxu2 %v110_v6  ;;  %294 = vmatpush.msrb.mxu3 %v144_v7 }
  0x27   :  { %235 = vmatpush.msrb.mxu0 %v46_v8  ;;  %254 = vmatpush.msrb.mxu1 %v80_v9 }
  0x28   :  { %276 = vmatpush.msrb.mxu2 %v108_v10  ;;  %295 = vmatpush.msrb.mxu3 %v142_v11 }
  0x29   :  { %236 = vmatpush.msrb.mxu0 %v44_v12  ;;  %255 = vmatpush.msrb.mxu1 %v78_v13 }
  0x2a   :  { %277 = vmatpush.msrb.mxu2 %v106_v14  ;;  %296 = vmatpush.msrb.mxu3 %v140_v15 }
  0x2b   :  { %237 = vmatpush.msrb.mxu0 %v42_v16  ;;  %256 = vmatpush.msrb.mxu1 %v76_v17 }
  0x2c   :  { %278 = vmatpush.msrb.mxu2 %v104_v18  ;;  %297 = vmatpush.msrb.mxu3 %v138_v19 }
  0x2d   :  { %238 = vmatpush.msrb.mxu0 %v40_v20  ;;  %257 = vmatpush.msrb.mxu1 %v74_v21 }
  0x2e   :  { %279 = vmatpush.msrb.mxu2 %v102_v22  ;;  %298 = vmatpush.msrb.mxu3 %v136_v23 }
  0x2f   :  { %8 = vsyncpa [#allocation3], 0  ;;  %239 = vmatpush.msrb.mxu0 %v38_v24  ;;  %258 = vmatpush.msrb.mxu1 %v72_v25  ;;  %v98_v30 = vld [vmem:[%s783_s1 + $0x278] sm:$0xff]  ;;  %v132_v31 = vld [vmem:[%s783_s1 + $0x388] sm:$0xff]  ;;  %s323_s9 = sshll.u32 %s785_s3, 4  ;;  %vm314_vm0 = vcmask 523264   ;;  %s324_s9 = int_to_ptr.hbm [resolvable:$true] %s323_s9 }
  0x30   :  { %280 = vmatpush.msrb.mxu2 %v100_v26  ;;  %299 = vmatpush.msrb.mxu3 %v134_v27  ;;  %v34_v32 = vld [vmem:[%s783_s1 + $0x78] sm:$0xff]  ;;  %v68_v33 = vld [vmem:[%s783_s1 + $0x188] sm:$0xff]  ;;  %v17_v44 = vld [vmem:[%s782_s0 + $0x10] sm:$0xff] }
  0x31   :  { %240 = vmatpush.msrb.mxu0 %v36_v28  ;;  %259 = vmatpush.msrb.mxu1 %v70_v29  ;;  %v96_v34 = vld [vmem:[%s783_s1 + $0x268] sm:$0xff]  ;;  %v130_v35 = vld [vmem:[%s783_s1 + $0x378] sm:$0xff]  ;;  %v15_v49 = vld [vmem:[%s782_s0] sm:$0xff] }
  0x32   :  { %281 = vmatpush.msrb.mxu2 %v98_v30  ;;  %300 = vmatpush.msrb.mxu3 %v132_v31  ;;  %v32_v36 = vld [vmem:[%s783_s1 + $0x68] sm:$0xff]  ;;  %v66_v37 = vld [vmem:[%s783_s1 + $0x178] sm:$0xff]  ;;  %v147_v4 = vld [vmem:[%s784_s2] sm:$0x3] }
  0x33   :  { %241 = vmatpush.msrb.mxu0 %v34_v32  ;;  %260 = vmatpush.msrb.mxu1 %v68_v33  ;;  %v94_v38 = vld [vmem:[%s783_s1 + $0x258] sm:$0xff]  ;;  %v128_v39 = vld [vmem:[%s783_s1 + $0x368] sm:$0xff]  ;;  %v149_v5 = vperm.slane %v147_v4, 0  ;;  %v150_v13 = vperm.slane %v147_v4, 1 }
  0x34   :  { %282 = vmatpush.msrb.mxu2 %v96_v34  ;;  %301 = vmatpush.msrb.mxu3 %v130_v35  ;;  %v30_v40 = vld [vmem:[%s783_s1 + $0x58] sm:$0xff]  ;;  %v64_v41 = vld [vmem:[%s783_s1 + $0x168] sm:$0xff] }
  0x35   :  { %242 = vmatpush.msrb.mxu0 %v32_v36  ;;  %261 = vmatpush.msrb.mxu1 %v66_v37  ;;  %v92_v42 = vld [vmem:[%s783_s1 + $0x248] sm:$0xff]  ;;  %v126_v43 = vld [vmem:[%s783_s1 + $0x358] sm:$0xff] }
  0x36   :  { %283 = vmatpush.msrb.mxu2 %v94_v38  ;;  %302 = vmatpush.msrb.mxu3 %v128_v39  ;;  %v28_v45 = vld [vmem:[%s783_s1 + $0x48] sm:$0xff]  ;;  %v62_v46 = vld [vmem:[%s783_s1 + $0x158] sm:$0xff] }
  0x37   :  { %243 = vmatpush.msrb.mxu0 %v30_v40  ;;  %262 = vmatpush.msrb.mxu1 %v64_v41  ;;  %v90_v47 = vld [vmem:[%s783_s1 + $0x238] sm:$0xff]  ;;  %v124_v48 = vld [vmem:[%s783_s1 + $0x348] sm:$0xff] }
  0x38   :  { %284 = vmatpush.msrb.mxu2 %v92_v42  ;;  %303 = vmatpush.msrb.mxu3 %v126_v43  ;;  %v18_v50 = vld [vmem:[%s782_s0 + $0x18] sm:$0xff]  ;;  %v60_v52 = vld [vmem:[%s783_s1 + $0x148] sm:$0xff] }
  0x39   :  { %209 = vmatmul.f32.vlgmr.msra.gmra.mxu2 %v17_v44  ;;  %244 = vmatpush.msrb.mxu0 %v28_v45  ;;  %v26_v51 = vld [vmem:[%s783_s1 + $0x38] sm:$0xff]  ;;  %v88_v53 = vld [vmem:[%s783_s1 + $0x228] sm:$0xff] }
  0x3a   :  { %263 = vmatpush.msrb.mxu1 %v62_v46  ;;  %285 = vmatpush.msrb.mxu2 %v90_v47  ;;  %v122_v54 = vld [vmem:[%s783_s1 + $0x338] sm:$0xff]  ;;  %v16_v55 = vld [vmem:[%s782_s0 + $0x8] sm:$0xff] }
  0x3b   :  { %304 = vmatpush.msrb.mxu3 %v124_v48  ;;  %169 = vmatmul.f32.vlgmr.msra.gmra.mxu0 %v15_v49  ;;  %v24_v56 = vld [vmem:[%s783_s1 + $0x28] sm:$0xff]  ;;  %v58_v57 = vld [vmem:[%s783_s1 + $0x138] sm:$0xff] }
  0x3c   :  { %229 = vmatmul.f32.vlgmr.msra.gmra.mxu3 %v18_v50  ;;  %245 = vmatpush.msrb.mxu0 %v26_v51  ;;  %v86_v58 = vld [vmem:[%s783_s1 + $0x218] sm:$0xff]  ;;  %v120_v59 = vld [vmem:[%s783_s1 + $0x328] sm:$0xff] }
  0x3d   :  { %264 = vmatpush.msrb.mxu1 %v60_v52  ;;  %286 = vmatpush.msrb.mxu2 %v88_v53  ;;  %v22_v60 = vld [vmem:[%s783_s1 + $0x18] sm:$0xff]  ;;  %v56_v61 = vld [vmem:[%s783_s1 + $0x128] sm:$0xff] }
  0x3e   :  { %305 = vmatpush.msrb.mxu3 %v122_v54  ;;  %189 = vmatmul.f32.vlgmr.msra.gmra.mxu1 %v16_v55  ;;  %v84_v62 = vld [vmem:[%s783_s1 + $0x208] sm:$0xff]  ;;  %v118_v63 = vld [vmem:[%s783_s1 + $0x318] sm:$0xff] }
  0x3f   :  { %246 = vmatpush.msrb.mxu0 %v24_v56  ;;  %265 = vmatpush.msrb.mxu1 %v58_v57  ;;  %v20_v0 = vld [vmem:[%s783_s1 + $0x8] sm:$0xff]  ;;  %v54_v1 = vld [vmem:[%s783_s1 + $0x118] sm:$0xff] }
  0x40   :  { %287 = vmatpush.msrb.mxu2 %v86_v58  ;;  %306 = vmatpush.msrb.mxu3 %v120_v59  ;;  %v116_v2 = vld [vmem:[%s783_s1 + $0x308] sm:$0xff] }
  0x41   :  { %247 = vmatpush.msrb.mxu0 %v22_v60  ;;  %266 = vmatpush.msrb.mxu1 %v56_v61  ;;  %v52_v3 = vld [vmem:[%s783_s1 + $0x108] sm:$0xff]  ;;  %s359_s1 = smov [#allocation2]  }
  0x42   :  { %288 = vmatpush.msrb.mxu2 %v84_v62  ;;  %307 = vmatpush.msrb.mxu3 %v118_v63  ;;  %s321_s7 = sshll.u32 %s359_s1, 4  ;;  %s322_s7 = int_to_ptr.vmem [resolvable:$true] %s321_s7 }
  0x43   :  { %289 = vmatmul.f32.vlgmr.msrb.gmra.mxu2 %v17_v44  ;;  %248 = vmatpush.msrb.mxu0 %v20_v0 }
  0x44   :  { %267 = vmatpush.msrb.mxu1 %v54_v1  ;;  %308 = vmatpush.msrb.mxu3 %v116_v2 }
  0x45   :  { %249 = vmatmul.f32.vlgmr.msrb.gmra.mxu0 %v15_v49  ;;  %309 = vmatmul.f32.vlgmr.msrb.gmra.mxu3 %v18_v50 }
  0x46   :  { %268 = vmatpush.msrb.mxu1 %v52_v3 }
  0x47   :  { %269 = vmatmul.f32.vlgmr.msrb.gmra.mxu1 %v16_v55 }
  0xb8   :  { %v170_v6 = vpop.f32.mrf.mxu0 }
  0xb9   :  { %v171_v7 = vadd.f32 %v170_v6, %v149_v5 }
  0xbb   :  { %v190_v8 = vpop.f32.mrf.mxu1 }
  0xbc   :  { %v191_v9 = vadd.f32 %v190_v8, %v171_v7  ;;  %v210_v10 = vpop.f32.mrf.mxu2 }
  0xbe   :  { %v211_v11 = vadd.f32 %v210_v10, %v191_v9 }
  0xbf   :  { %v230_v12 = vpop.f32.mrf.mxu3 }
  0xc0   :  { %v231_v14 = vadd.f32 %v230_v12, %v211_v11 }
  0xc2   :  { %313 = vst [vmem:[#allocation2] sm:$0xff] %v231_v14  ;;  %v250_v15 = vpop.f32.mrf.mxu0 }
  0xc3   :  { %v251_v16 = vadd.f32 %v250_v15, %v150_v13 }
  0xc4   :  { %v270_v17 = vpop.f32.mrf.mxu1 }
  0xc5   :  { %v271_v18 = vadd.f32 %v270_v17, %v251_v16 }
  0xc6   :  { %v290_v19 = vpop.f32.mrf.mxu2 }
  0xc7   :  { %v291_v20 = vadd.f32 %v290_v19, %v271_v18 }
  0xc8   :  { %v310_v21 = vpop.f32.mrf.mxu3 }
  0xc9   :  { %v311_v22 = vadd.f32 %v310_v21, %v291_v20 }
  0xcb   :  { %315 = vst.msk [vmem:[#allocation2 + $0x8] sm:$0xff] %vm314_vm0, %v311_v22 }
  0xcc   :  { %326 = dma.vmem_to_hbm [thread:$0]  %s322_s7, 256, %s324_s9, [#allocation3]  }
  0xcd   :  { %357 = dma.done.wait [#allocation3], 256  }
  0xce   :  { %358 = vsyncadd [#allocation3], 4294967040 }
  0xcf   :  { %331 = vsyncpa [#allocation3], 1 }

</bundles_post_ra>
